<compile_context>
chip_gen: v6e
topology: v6e:2x2x1
jax: 0.10.0
libtpu: 0.0.40
codegen_flags: <defaults>
</compile_context>

<pallas_src>
import functools
import math

import jax
import jax.numpy as jnp
from jax import lax
from jax.experimental import pallas as pl
from jax.experimental.pallas import tpu as pltpu


# ----------------------------------------------------------------------------
# Pallas kernel: fused (im2col-matmul + bias + capsule squash) on one M-tile
# ----------------------------------------------------------------------------
# TODO(synk): squash() is not defined in the provided spec; the standard
# CapsNet squash  s * |s|^2 / ((1 + |s|^2) * |s|)  along the last
# (num_capsules) axis is assumed here.
def _conv_caps_kernel(a_ref, w_ref, bias_ref, o_ref, *, num_caps, cap_dim_p):
    acc = jnp.dot(a_ref[...], w_ref[...], preferred_element_type=jnp.float32)
    acc = acc + bias_ref[...]                       # (TM, num_caps * cap_dim_p)

    # Column layout is c = cap * cap_dim_p + d.  The squash norm for a fixed d
    # sums squares over capsules, i.e. over the num_caps slabs of width
    # cap_dim_p (static-offset lane slices).
    sq = acc * acc
    norm = sq[:, 0:cap_dim_p]
    for cap in range(1, num_caps):
        norm = norm + sq[:, cap * cap_dim_p:(cap + 1) * cap_dim_p]
    scale = (norm / (1.0 + norm)) * lax.rsqrt(norm + 1e-8)   # (TM, cap_dim_p)
    scale = jnp.concatenate([scale] * num_caps, axis=1)      # (TM, Cout_p)
    o_ref[...] = (acc * scale).astype(o_ref.dtype)


# ----------------------------------------------------------------------------
# Helpers
# ----------------------------------------------------------------------------
def _round_up(x, m):
    return (x + m - 1) // m * m


def _choose_tm(m_rows):
    """Prefer big M tiles (mem-bound), but keep >= 2 grid steps when M allows
    so the 'parallel' grid axis can shard across v7x's two TensorCores."""
    mp = _round_up(m_rows, 8)
    for tm in (512, 256, 128):
        if mp > tm:
            return tm
    return mp


def _vmem_limit_bytes(tm, kp, np_):
    a = tm * kp * 2          # bf16 A tile
    w = kp * np_ * 2         # bf16 weight block (constant across grid)
    bias = np_ * 4
    out = tm * np_ * 4
    # double-buffered operands/output + compiler scratch headroom
    need = 2 * (a + w + bias + out) + (4 << 20)
    return int(min(max(need, 8 << 20), 48 << 20))   # stay well under v7x's 64 MiB


# ----------------------------------------------------------------------------
# Forward pass (mirrors PrimaryCapsules.forward)
# ----------------------------------------------------------------------------
def primary_capsules_forward(x, w, b, *, stride, padding, num_capsules, capsule_dim):
    """x: [B, Cin, L] (PyTorch NCL).  w: [Cout, Cin, k].  b: [Cout].
    Returns [B, L_out, capsule_dim, num_capsules]
    (== conv -> view(B, num_caps, cap_dim, L) -> transpose(1, 3) -> squash)."""
    B, Cin, L = x.shape
    Cout, _, k = w.shape
    assert Cout == num_capsules * capsule_dim

    L_out = (L + 2 * padding - k) // stride + 1
    M = B * L_out
    K = k * Cin

    # --- im2col (columns ordered (tap, cin)) --------------------------------
    x_nlc = jnp.transpose(x, (0, 2, 1))
    xp = jnp.pad(x_nlc, ((0, 0), (padding, padding), (0, 0)))
    taps = [xp[:, t:t + stride * L_out:stride, :] for t in range(k)]
    A = jnp.concatenate(taps, axis=-1).reshape(M, K)
    Wm = jnp.transpose(w, (2, 1, 0)).reshape(K, Cout)      # row = tap*Cin + cin

    # --- pad capsule dim so Cout is a lane-dense multiple of 128 ------------
    g = 128 // math.gcd(num_capsules, 128)
    cap_dim_p = _round_up(capsule_dim, g)
    if cap_dim_p != capsule_dim:
        pad_d = cap_dim_p - capsule_dim
        Wm = jnp.pad(Wm.reshape(K, num_capsules, capsule_dim),
                     ((0, 0), (0, 0), (0, pad_d))).reshape(K, num_capsules * cap_dim_p)
        bias = jnp.pad(b.reshape(num_capsules, capsule_dim),
                       ((0, 0), (0, pad_d))).reshape(-1)
    else:
        bias = b
    Cout_p = num_capsules * cap_dim_p

    # --- pad M / K for TPU tiling, cast MXU operands to bf16 ----------------
    TM = _choose_tm(M)
    Mp = _round_up(M, TM)
    Kp = _round_up(K, 128)
    A_p = jnp.pad(A, ((0, Mp - M), (0, Kp - K))).astype(jnp.bfloat16)
    W_p = jnp.pad(Wm, ((0, Kp - K), (0, 0))).astype(jnp.bfloat16)
    bias_p = bias.astype(jnp.float32).reshape(1, Cout_p)

    out = pl.pallas_call(
        functools.partial(_conv_caps_kernel,
                          num_caps=num_capsules, cap_dim_p=cap_dim_p),
        out_shape=jax.ShapeDtypeStruct((Mp, Cout_p), jnp.float32),
        grid_spec=pltpu.PrefetchScalarGridSpec(
            num_scalar_prefetch=0,
            grid=(Mp // TM,),
            in_specs=[
                pl.BlockSpec((TM, Kp), lambda i: (i, 0)),
                pl.BlockSpec((Kp, Cout_p), lambda i: (0, 0)),
                pl.BlockSpec((1, Cout_p), lambda i: (0, 0)),
            ],
            out_specs=pl.BlockSpec((TM, Cout_p), lambda i: (i, 0)),
        ),
        compiler_params=pltpu.CompilerParams(
            dimension_semantics=("parallel",),
            vmem_limit_bytes=_vmem_limit_bytes(TM, Kp, Cout_p),
        ),
    )(A_p, W_p, bias_p)

    out = out[:M].reshape(B, L_out, num_capsules, cap_dim_p)[..., :capsule_dim]
    # (B, L_out, num_caps, cap_dim) -> (B, L_out, cap_dim, num_caps)
    return jnp.swapaxes(out, 2, 3)


# ----------------------------------------------------------------------------
# Pure-JAX reference (for correctness check only)
# ----------------------------------------------------------------------------
def _reference_forward(x, w, b, *, stride, padding, num_capsules, capsule_dim):
    y = lax.conv_general_dilated(
        x.astype(jnp.float32), w.astype(jnp.float32),
        window_strides=(stride,), padding=[(padding, padding)],
        dimension_numbers=("NCH", "OIH", "NCH"))
    y = y + b[None, :, None]
    B, _, L = y.shape
    y = y.reshape(B, num_capsules, capsule_dim, L)
    y = jnp.transpose(y, (0, 3, 2, 1))                       # (B, L, dim, caps)
    sq = jnp.sum(y * y, axis=-1, keepdims=True)
    return (sq / (1.0 + sq)) * y * lax.rsqrt(sq + 1e-8)


# ----------------------------------------------------------------------------
if __name__ == "__main__":
    # Module hyper-parameters (capsule_dim must equal out_channels for the
    # PyTorch view(batch, num_caps, capsule_dim, length) to be valid).
    in_channels, out_channels = 4, 32
    kernel_size, stride, padding = 3, 2, 1
    num_capsules, capsule_dim = 8, 32
    B, L = 2, 16

    key = jax.random.PRNGKey(0)
    kx, kw, kb = jax.random.split(key, 3)
    fan_in = in_channels * kernel_size
    bound = 1.0 / (fan_in ** 0.5)
    w = jax.random.uniform(kw, (out_channels * num_capsules, in_channels, kernel_size),
                           jnp.float32, -bound, bound)
    b = jax.random.uniform(kb, (out_channels * num_capsules,), jnp.float32, -bound, bound)
    x = jax.random.normal(kx, (B, in_channels, L), jnp.float32)

    fwd = jax.jit(functools.partial(primary_capsules_forward,
                                    stride=stride, padding=padding,
                                    num_capsules=num_capsules,
                                    capsule_dim=capsule_dim))
    y = fwd(x, w, b)
    jax.block_until_ready(y)

    L_out = (L + 2 * padding - kernel_size) // stride + 1
    assert y.shape == (B, L_out, capsule_dim, num_capsules), y.shape
    assert bool(jnp.all(jnp.isfinite(y)))

    y_ref = _reference_forward(x, w, b, stride=stride, padding=padding,
                               num_capsules=num_capsules, capsule_dim=capsule_dim)
    assert bool(jnp.allclose(y, y_ref, atol=5e-2, rtol=5e-2)), \
        float(jnp.max(jnp.abs(y - y_ref)))

    print("KERNEL_OK")
</pallas_src>

<mosaic_0001>
module attributes {stable_mosaic.version = 11 : i64} {
  func.func @_conv_caps_kernel(%arg0: i32, %arg1: memref<16x128xbf16, #tpu.memory_space<vmem>>, %arg2: memref<128x256xbf16, #tpu.memory_space<vmem>>, %arg3: memref<1x256xf32, #tpu.memory_space<vmem>>, %arg4: memref<16x256xf32, #tpu.memory_space<vmem>>) attributes {dimension_semantics = [#tpu.dimension_semantics<parallel>], iteration_bounds = array<i64: 1>, scalar_prefetch = 0 : i64, scratch_operands = 0 : i64, tpu.core_type = #tpu.core_type<tc>, window_params = [{transform_indices = @transform_0, window_bounds = array<i64: 16, 128>}, {pipeline_mode = #tpu.pipeline_mode<synchronous>, transform_indices = @transform_1, window_bounds = array<i64: 128, 256>}, {pipeline_mode = #tpu.pipeline_mode<synchronous>, transform_indices = @transform_2, window_bounds = array<i64: 1, 256>}, {transform_indices = @transform_3, window_bounds = array<i64: 16, 256>}]} {
    %c0 = arith.constant 0 : index
    %c0_0 = arith.constant 0 : index
    %0 = vector.load %arg1[%c0, %c0_0] : memref<16x128xbf16, #tpu.memory_space<vmem>>, vector<16x128xbf16>
    %c0_1 = arith.constant 0 : index
    %c0_2 = arith.constant 0 : index
    %1 = vector.load %arg2[%c0_1, %c0_2] : memref<128x256xbf16, #tpu.memory_space<vmem>>, vector<128x256xbf16>
    %cst = arith.constant dense<0.000000e+00> : vector<16x256xf32>
    %2 = tpu.matmul %0, %1, %cst {dimension_numbers = #tpu.dot_dimension_numbers<[1], [0], [0], [1], [0, 0, 1, 1], [], []>} : vector<16x128xbf16>, vector<128x256xbf16>, vector<16x256xf32> -> vector<16x256xf32>
    %c0_3 = arith.constant 0 : index
    %c0_4 = arith.constant 0 : index
    %3 = vector.load %arg3[%c0_3, %c0_4] : memref<1x256xf32, #tpu.memory_space<vmem>>, vector<1x256xf32>
    %4 = vector.broadcast %3 : vector<1x256xf32> to vector<16x256xf32>
    %5 = arith.addf %2, %4 : vector<16x256xf32>
    %6 = arith.mulf %5, %5 : vector<16x256xf32>
    %7 = vector.extract_strided_slice %6 {offsets = [0, 0], sizes = [16, 32], strides = [1, 1]} : vector<16x256xf32> to vector<16x32xf32>
    %8 = vector.extract_strided_slice %6 {offsets = [0, 32], sizes = [16, 32], strides = [1, 1]} : vector<16x256xf32> to vector<16x32xf32>
    %9 = arith.addf %7, %8 : vector<16x32xf32>
    %10 = vector.extract_strided_slice %6 {offsets = [0, 64], sizes = [16, 32], strides = [1, 1]} : vector<16x256xf32> to vector<16x32xf32>
    %11 = arith.addf %9, %10 : vector<16x32xf32>
    %12 = vector.extract_strided_slice %6 {offsets = [0, 96], sizes = [16, 32], strides = [1, 1]} : vector<16x256xf32> to vector<16x32xf32>
    %13 = arith.addf %11, %12 : vector<16x32xf32>
    %14 = vector.extract_strided_slice %6 {offsets = [0, 128], sizes = [16, 32], strides = [1, 1]} : vector<16x256xf32> to vector<16x32xf32>
    %15 = arith.addf %13, %14 : vector<16x32xf32>
    %16 = vector.extract_strided_slice %6 {offsets = [0, 160], sizes = [16, 32], strides = [1, 1]} : vector<16x256xf32> to vector<16x32xf32>
    %17 = arith.addf %15, %16 : vector<16x32xf32>
    %18 = vector.extract_strided_slice %6 {offsets = [0, 192], sizes = [16, 32], strides = [1, 1]} : vector<16x256xf32> to vector<16x32xf32>
    %19 = arith.addf %17, %18 : vector<16x32xf32>
    %20 = vector.extract_strided_slice %6 {offsets = [0, 224], sizes = [16, 32], strides = [1, 1]} : vector<16x256xf32> to vector<16x32xf32>
    %21 = arith.addf %19, %20 : vector<16x32xf32>
    %cst_5 = arith.constant 1.000000e+00 : f32
    %22 = vector.broadcast %cst_5 : f32 to vector<16x32xf32>
    %23 = arith.addf %22, %21 : vector<16x32xf32>
    %24 = arith.divf %21, %23 : vector<16x32xf32>
    %cst_6 = arith.constant 9.99999993E-9 : f32
    %25 = vector.broadcast %cst_6 : f32 to vector<16x32xf32>
    %26 = arith.addf %21, %25 : vector<16x32xf32>
    %27 = math.rsqrt %26 : vector<16x32xf32>
    %28 = arith.mulf %24, %27 : vector<16x32xf32>
    %29 = tpu.concatenate %28, %28, %28, %28, %28, %28, %28, %28 in 1 : vector<16x32xf32>, vector<16x32xf32>, vector<16x32xf32>, vector<16x32xf32>, vector<16x32xf32>, vector<16x32xf32>, vector<16x32xf32>, vector<16x32xf32> -> vector<16x256xf32>
    %30 = arith.mulf %5, %29 : vector<16x256xf32>
    %c0_7 = arith.constant 0 : index
    %c0_8 = arith.constant 0 : index
    %31 = vector.load %arg4[%c0_7, %c0_8] : memref<16x256xf32, #tpu.memory_space<vmem>>, vector<16x256xf32>
    tpu.vector_store %arg4[%c0_7, %c0_8], %30 {strides = array<i32>} : memref<16x256xf32, #tpu.memory_space<vmem>>, vector<16x256xf32>,
    return
  }
  func.func @transform_0(%arg0: i32) -> (i32, i32) {
    %c0_i32 = arith.constant 0 : i32
    %c0_i32_0 = arith.constant 0 : i32
    return %arg0, %c0_i32 : i32, i32
  }
  func.func @transform_1(%arg0: i32) -> (i32, i32) {
    %c0_i32 = arith.constant 0 : i32
    %c0_i32_0 = arith.constant 0 : i32
    %c0_i32_1 = arith.constant 0 : i32
    return %c0_i32, %c0_i32_0 : i32, i32
  }
  func.func @transform_2(%arg0: i32) -> (i32, i32) {
    %c0_i32 = arith.constant 0 : i32
    %c0_i32_0 = arith.constant 0 : i32
    %c0_i32_1 = arith.constant 0 : i32
    return %c0_i32, %c0_i32_0 : i32, i32
  }
  func.func @transform_3(%arg0: i32) -> (i32, i32) {
    %c0_i32 = arith.constant 0 : i32
    %c0_i32_0 = arith.constant 0 : i32
    return %arg0, %c0_i32 : i32, i32
  }
}

</mosaic_0001>

<bundles_post_ra>
// kernel: primary_capsules_forward.1
= control target key start
LH: loop header
LB: loop body
LE: loop exit
PB: predicated region body
PF: predicated region fallthrough
CT: control target
= control target key end

     0   :  { %v339_v1 = vmov 0   ;;  %v35_v18 = vlaneseq  ;;  %vm264_vm0 = vcmask 261120   ;;  %vm267_vm1 = vcmask 523264   ;;  %s467_s1 = inlined_call_operand.vmem [shape: bf16[128,256], index: 1, kind: input, shape index: {}]   ;;  %s468_s0 = inlined_call_operand.vmem [shape: bf16[16,128], index: 0, kind: input, shape index: {}]   ;;  %s469_s2 = inlined_call_operand.vmem [shape: f32[1,256], index: 2, kind: input, shape index: {}]   ;;  %s470_s3 = inlined_call_operand.vmem [shape: f32[16,256], index: 3, kind: output, shape index: {}]  }
   0x1   :  { %v306_v0 = vld [vmem:[%s467_s1 + $0x74] ss:$8 sps:$4 sm:$0xff]   ;;  %163 = vmatprep.mubr.bf16.mxu0 %v339_v1  ;;  %v308_v2 = vld [vmem:[%s467_s1 + $0x70] ss:$8 sps:$4 sm:$0xff]   ;;  %v309_v3 = vld [vmem:[%s467_s1 + $0x64] ss:$8 sps:$4 sm:$0xff]  }
   0x2   :  { %131 = vmatprep.subr.bf16.mxu0 %v306_v0  ;;  %v311_v4 = vld [vmem:[%s467_s1 + $0x60] ss:$8 sps:$4 sm:$0xff]   ;;  %v312_v5 = vld [vmem:[%s467_s1 + $0x54] ss:$8 sps:$4 sm:$0xff]   ;;  %v314_v6 = vld [vmem:[%s467_s1 + $0x50] ss:$8 sps:$4 sm:$0xff]  }
   0x3   :  { %132 = vmatpush1.bf16.msra.mxu0 %v308_v2  ;;  %v315_v7 = vld [vmem:[%s467_s1 + $0x44] ss:$8 sps:$4 sm:$0xff]   ;;  %v317_v8 = vld [vmem:[%s467_s1 + $0x40] ss:$8 sps:$4 sm:$0xff]   ;;  %v318_v9 = vld [vmem:[%s467_s1 + $0x34] ss:$8 sps:$4 sm:$0xff]  }
   0x4   :  { %133 = vmatprep.subr.bf16.mxu0 %v309_v3  ;;  %v320_v10 = vld [vmem:[%s467_s1 + $0x30] ss:$8 sps:$4 sm:$0xff]   ;;  %v321_v11 = vld [vmem:[%s467_s1 + $0x24] ss:$8 sps:$4 sm:$0xff]   ;;  %v323_v12 = vld [vmem:[%s467_s1 + $0x20] ss:$8 sps:$4 sm:$0xff]  }
   0x5   :  { %v324_v13 = vld [vmem:[%s467_s1 + $0x14] ss:$8 sps:$4 sm:$0xff]   ;;  %v326_v14 = vld [vmem:[%s467_s1 + $0x10] ss:$8 sps:$4 sm:$0xff]   ;;  %v327_v15 = vld [vmem:[%s467_s1 + $0x4] ss:$8 sps:$4 sm:$0xff]  }
   0x6   :  { %v329_v16 = vld [vmem:[%s467_s1] ss:$8 sps:$4 sm:$0xff]   ;;  %v36_v19 = vshrl.u32 %v35_v18, 7  ;;  %s341_s1 = smov 96   ;;  %vm270_vm2 = vcmask 785408  }
   0x7   :  { %134 = vmatpush1.bf16.msra.mxu0 %v311_v4  ;;  %v330_v17 = vld [vmem:[%s468_s0] sm:$0xff]   ;;  %s340_s0 = smov 64  }
   0x8   :  { %135 = vmatprep.subr.bf16.mxu0 %v312_v5  ;;  %v37_v20 = vsub.s32 0, %v36_v19  ;;  %v33_v21 = vld [vmem:[%s469_s2] sm:$0x3]  ;;  %v41_v27 = vsub.s32 1, %v36_v19  ;;  %s342_s2 = smov 32  }
   0xa   :  { %v38_v22 = vrot.slane %v33_v21, %v37_v20  ;;  %v42_v30 = vrot.slane %v33_v21, %v41_v27 }
   0xb   :  { %136 = vmatpush1.bf16.msra.mxu0 %v314_v6 }
   0xc   :  { %137 = vmatprep.subr.bf16.mxu0 %v315_v7 }
   0xf   :  { %138 = vmatpush1.bf16.msra.mxu0 %v317_v8 }
  0x10   :  { %139 = vmatprep.subr.bf16.mxu0 %v318_v9 }
  0x13   :  { %140 = vmatpush1.bf16.msra.mxu0 %v320_v10 }
  0x14   :  { %141 = vmatprep.subr.bf16.mxu0 %v321_v11 }
  0x17   :  { %142 = vmatpush1.bf16.msra.mxu0 %v323_v12 }
  0x18   :  { %143 = vmatprep.subr.bf16.mxu0 %v324_v13 }
  0x1b   :  { %144 = vmatpush1.bf16.msra.mxu0 %v326_v14 }
  0x1c   :  { %145 = vmatprep.subr.bf16.mxu0 %v327_v15 }
  0x1f   :  { %146 = vmatpush1.bf16.msra.mxu0 %v329_v16 }
  0x22   :  { %164 = vmatmul.mubr.bf16.vlgmr.msra.gmra.mxu0 %v330_v17 }
  0xe2   :  { %v165_v23 = vpop.f32.mrf.mxu0 }
  0xe3   :  { %v417_v24 = vadd.f32 %v165_v23, %v38_v22 }
  0xe4   :  { %v167_v25 = vpop.f32.mrf.mxu0 }
  0xe5   :  { %v174_v26 = vmul.f32 %v417_v24, %v417_v24  ;;  %v429_v33 = vadd.f32 %v167_v25, %v42_v30 }
  0xe6   :  { %v169_v28 = vpop.f32.mrf.mxu0 }
  0xe7   :  { %v421_v29 = vadd.f32 %v169_v28, %v38_v22  ;;  %188 = vrot.lane.b32.xlu1 %v174_v26, %s340_s0  ;;  %180 = vrot.lane.b32.xlu0 %v174_v26, %s341_s1  ;;  %v175_v35 = vmul.f32 %v429_v33, %v429_v33 }
  0xe8   :  { %v171_v32 = vpop.f32.mrf.mxu0 }
  0xe9   :  { %v176_v31 = vmul.f32 %v421_v29, %v421_v29  ;;  %v431_v34 = vadd.f32 %v171_v32, %v42_v30 }
  0xeb   :  { %190 = vrot.lane.b32.xlu1 %v176_v31, %s340_s0  ;;  %196 = vrot.lane.b32.xlu0 %v174_v26, %s342_s2  ;;  %v177_v36 = vmul.f32 %v431_v34, %v431_v34 }
  0xef   :  { %198 = vrot.lane.b32.xlu1 %v176_v31, %s342_s2  ;;  %182 = vrot.lane.b32.xlu0 %v176_v31, %s341_s1 }
  0xf3   :  { %210 = vrot.lane.b32.xlu1 %v177_v36, %s341_s1  ;;  %208 = vrot.lane.b32.xlu0 %v175_v35, %s341_s1 }
  0xf7   :  { %218 = vrot.lane.b32.xlu1 %v177_v36, %s340_s0  ;;  %216 = vrot.lane.b32.xlu0 %v175_v35, %s340_s0 }
  0xfb   :  { %226 = vrot.lane.b32.xlu1 %v177_v36, %s342_s2  ;;  %224 = vrot.lane.b32.xlu0 %v175_v35, %s342_s2 }
 0x159   :  { %v189_v37 = vpop.permute.xlu1 %188  ;;  %v181_v38 = vpop.permute.xlu0 %180 }
 0x15a   :  { %v186_v39 = vadd.f32 %v181_v38, %v174_v26 }
 0x15c   :  { %v194_v42 = vadd.f32 %v189_v37, %v186_v39 }
 0x15d   :  { %v191_v40 = vpop.permute.xlu1 %190  ;;  %v197_v41 = vpop.permute.xlu0 %196 }
 0x15e   :  { %v202_v46 = vadd.f32 %v197_v41, %v194_v42 }
 0x160   :  { %v204_v52 = vadd.f32 %v202_v46, %v175_v35 }
 0x161   :  { %v199_v43 = vpop.permute.xlu1 %198  ;;  %v183_v44 = vpop.permute.xlu0 %182 }
 0x162   :  { %v187_v45 = vadd.f32 %v183_v44, %v176_v31 }
 0x164   :  { %v195_v47 = vadd.f32 %v191_v40, %v187_v45 }
 0x165   :  { %v211_v48 = vpop.permute.xlu1 %210  ;;  %v209_v49 = vpop.permute.xlu0 %208 }
 0x166   :  { %v203_v50 = vadd.f32 %v199_v43, %v195_v47  ;;  %v214_v56 = vadd.f32 %v209_v49, %v204_v52 }
 0x168   :  { %v205_v51 = vadd.f32 %v203_v50, %v177_v36 }
 0x169   :  { %v219_v53 = vpop.permute.xlu1 %218  ;;  %v217_v54 = vpop.permute.xlu0 %216 }
 0x16a   :  { %v215_v55 = vadd.f32 %v211_v48, %v205_v51  ;;  %v222_v58 = vadd.f32 %v217_v54, %v214_v56 }
 0x16c   :  { %v223_v57 = vadd.f32 %v219_v53, %v215_v55 }
 0x16d   :  { %v227_v59 = vpop.permute.xlu1 %226  ;;  %v225_v60 = vpop.permute.xlu0 %224 }
 0x16e   :  { %v231_v61 = vadd.f32 %v227_v59, %v223_v57  ;;  %v230_v62 = vadd.f32 %v225_v60, %v222_v58 }
 0x170   :  { %v233_v63 = vadd.f32 1.0, %v231_v61  ;;  %v239_v0 = vadd.f32 1e-08, %v231_v61  ;;  %v232_v1 = vadd.f32 1.0, %v230_v62  ;;  %v238_v2 = vadd.f32 1e-08, %v230_v62 }
 0x172   :  { %331 = vrcp.f32 %v233_v63 }
 0x173   :  { %333 = vrsqrt.f32 %v239_v0 }
 0x174   :  { %335 = vrcp.f32 %v232_v1 }
 0x175   :  { %337 = vrsqrt.f32 %v238_v2 }
 0x17f   :  { %v332_v3 = vpop.eup %331 }
 0x180   :  { %v334_v4 = vpop.eup %333  ;;  %v237_v5 = vmul.f32 %v332_v3, %v231_v61 }
 0x181   :  { %v336_v6 = vpop.eup %335 }
 0x182   :  { %v243_v7 = vmul.f32 %v334_v4, %v237_v5  ;;  %v235_v8 = vmul.f32 %v336_v6, %v230_v62  ;;  %v338_v9 = vpop.eup %337 }
 0x184   :  { %v242_v10 = vmul.f32 %v338_v9, %v235_v8  ;;  %248 = vrot.lane.b32.xlu1 %v243_v7, %s342_s2 }
 0x186   :  { %246 = vrot.lane.b32.xlu0 %v242_v10, %s342_s2 }
 0x188   :  { %254 = vrot.lane.b32.xlu1 %v243_v7, %s340_s0 }
 0x18a   :  { %252 = vrot.lane.b32.xlu0 %v242_v10, %s340_s0 }
 0x18c   :  { %260 = vrot.lane.b32.xlu1 %v243_v7, %s341_s1 }
 0x18e   :  { %258 = vrot.lane.b32.xlu0 %v242_v10, %s341_s1 }
 0x1f6   :  { %v249_v11 = vpop.permute.xlu1 %248 }
 0x1f7   :  { %v266_v15 = vsel %vm264_vm0, %v243_v7, %v249_v11 }
 0x1f8   :  { %v247_v12 = vpop.permute.xlu0 %246 }
 0x1f9   :  { %v265_v18 = vsel %vm264_vm0, %v242_v10, %v247_v12 }
 0x1fa   :  { %v255_v13 = vpop.permute.xlu1 %254 }
 0x1fb   :  { %v269_v16 = vsel %vm267_vm1, %v266_v15, %v255_v13 }
 0x1fc   :  { %v253_v14 = vpop.permute.xlu0 %252 }
 0x1fd   :  { %v268_v20 = vsel %vm267_vm1, %v265_v18, %v253_v14 }
 0x1fe   :  { %v261_v17 = vpop.permute.xlu1 %260 }
 0x1ff   :  { %v272_v19 = vsel %vm270_vm2, %v269_v16, %v261_v17 }
 0x200   :  { %v275_v21 = vmul.f32 %v272_v19, %v421_v29  ;;  %v276_v22 = vmul.f32 %v272_v19, %v431_v34  ;;  %v259_v23 = vpop.permute.xlu0 %258 }
 0x201   :  { %v271_v25 = vsel %vm270_vm2, %v268_v20, %v259_v23 }
 0x202   :  { %279 = vst [vmem:[%s470_s3 + $0x10] sm:$0xff] %v275_v21  ;;  %280 = vst [vmem:[%s470_s3 + $0x18] sm:$0xff] %v276_v22  ;;  %v273_v26 = vmul.f32 %v271_v25, %v417_v24  ;;  %v274_v27 = vmul.f32 %v271_v25, %v429_v33 }
 0x204   :  { %277 = vst [vmem:[%s470_s3] sm:$0xff] %v273_v26  ;;  %278 = vst [vmem:[%s470_s3 + $0x8] sm:$0xff] %v274_v27 }

</bundles_post_ra>
